<compile_context>
chip_gen: v5e
topology: v5e:2x2
jax: 0.10.0
libtpu: 0.0.40
codegen_flags: <defaults>
</compile_context>

<pallas_src>
import functools

import numpy as np
import jax
import jax.numpy as jnp
from jax.experimental import pallas as pl
from jax.experimental.pallas import tpu as pltpu

_LANE = 128
_VMEM_LIMIT = 48 * 1024 * 1024        # safe on v7x (64 MiB), generous on v5e/v6e
_FAST_PATH_BYTES = 36 * 1024 * 1024   # VMEM-resident fast path threshold
# TODO(synk): re-derive the fast-path threshold per generation via
#             pltpu.get_tpu_info() (v7x has half the VMEM of v5e/v6e).


def _round_up(x, m):
    return ((x + m - 1) // m) * m


def _divisor_tile(n_pad, pref, min_tiles=1):
    """Largest multiple-of-128 divisor of n_pad that is <= pref and leaves at
    least `min_tiles` tiles (megacore balance on v7x). Falls back to 128."""
    nb = n_pad // _LANE
    pref_b = max(pref // _LANE, 1)
    best = 1
    for t in range(1, nb + 1):
        if nb % t == 0 and t <= pref_b and nb // t >= min_tiles:
            best = t
    return best * _LANE
    # TODO(synk): for awkward n_pad (e.g. 640) this collapses to 128 (~29% of
    # HBM roofline); re-padding to the next "nice" multiple would avoid it.


# ---------------------------------------------------------------------------
# Fast path: whole problem VMEM-resident, one pallas_call, all depth steps.
# ---------------------------------------------------------------------------
def _fused_resident_kernel(params_ref, r_ref, adj_ref, v0_ref, wt_ref, b_ref,
                           out_ref, *, depth):
    rs = params_ref[0]
    neg_inv_sig2 = params_ref[1]     # -1 / sigma^2
    pi_over_rc = params_ref[2]       # pi / rc
    rc = params_ref[3]

    r = r_ref[...]
    f = jnp.exp(jnp.square(r - rs) * neg_inv_sig2) * (0.5 * jnp.cos(r * pi_over_rc))
    msg = jnp.where(r < rc, f * adj_ref[...], 0.0).astype(jnp.bfloat16)

    v0 = v0_ref[...]                 # f32
    wt = wt_ref[...]                 # f32, W^T
    b = b_ref[...]                   # (1, D) f32

    vc = v0.astype(jnp.bfloat16)
    out = v0
    for _ in range(depth):           # depth is static -> unrolled
        svf = jnp.dot(msg, vc, preferred_element_type=jnp.float32)
        out = jnp.maximum(
            jnp.dot(svf + v0, wt, preferred_element_type=jnp.float32) + b, 0.0)
        vc = out.astype(jnp.bfloat16)
    out_ref[...] = out.astype(out_ref.dtype)


def _distance_conv_resident(params, r, adj, v0, wt, b_row, depth):
    n, d = v0.shape
    vmem = pltpu.MemorySpace.VMEM
    return pl.pallas_call(
        functools.partial(_fused_resident_kernel, depth=depth),
        out_shape=jax.ShapeDtypeStruct((n, d), jnp.float32),
        in_specs=[
            pl.BlockSpec(memory_space=pltpu.MemorySpace.SMEM),  # scalar params
            pl.BlockSpec(memory_space=vmem),                    # r
            pl.BlockSpec(memory_space=vmem),                    # adj
            pl.BlockSpec(memory_space=vmem),                    # v0
            pl.BlockSpec(memory_space=vmem),                    # W^T
            pl.BlockSpec(memory_space=vmem),                    # bias row
        ],
        out_specs=pl.BlockSpec(memory_space=vmem),
        compiler_params=pltpu.CompilerParams(vmem_limit_bytes=_VMEM_LIMIT),
    )(params, r, adj, v0, wt, b_row)


# ---------------------------------------------------------------------------
# Tiled path, kernel A: fused  msg = f(r)*adj  (bf16, edge-masked)  +  step 1
#   grid = (dst-row tiles "parallel", src-col tiles "arbitrary", last)
# ---------------------------------------------------------------------------
def _msg_first_step_kernel(params_ref, r_ref, adj_ref, vbf_ref, v0r_ref,
                           wt_ref, b_ref, msg_ref, v1_ref, acc_ref,
                           *, n, tm, tn):
    i = pl.program_id(0)
    j = pl.program_id(1)

    @pl.when(j == 0)
    def _init():
        acc_ref[...] = jnp.zeros_like(acc_ref)

    rs = params_ref[0]
    neg_inv_sig2 = params_ref[1]
    pi_over_rc = params_ref[2]
    rc = params_ref[3]

    r = r_ref[...]
    adj = adj_ref[...]
    f = jnp.exp(jnp.square(r - rs) * neg_inv_sig2) * (0.5 * jnp.cos(r * pi_over_rc))
    # Edge masking: r/adj are streamed unpadded, so out-of-range rows/cols of
    # the (partial) edge blocks contain garbage -> force them to exactly zero.
    rows = jax.lax.broadcasted_iota(jnp.int32, (tm, tn), 0) + i * tm
    cols = jax.lax.broadcasted_iota(jnp.int32, (tm, tn), 1) + j * tn
    valid = (rows < n) & (cols < n) & (r < rc)
    msg = jnp.where(valid, f * adj, 0.0).astype(jnp.bfloat16)
    msg_ref[...] = msg

    # First depth step, fused: acc += msg_tile @ v0[src tile]  (bf16 MXU, f32 acc)
    off = pl.multiple_of(j * tn, _LANE)
    acc_ref[...] += jnp.dot(msg, vbf_ref[pl.ds(off, tn), :],
                            preferred_element_type=jnp.float32)

    @pl.when(j == pl.num_programs(1) - 1)
    def _finalize():
        pre = jnp.dot(acc_ref[...] + v0r_ref[...], wt_ref[...],
                      preferred_element_type=jnp.float32) + b_ref[...]
        v1_ref[...] = jnp.maximum(pre, 0.0).astype(v1_ref.dtype)


def _fused_msg_first_step(params, r, adj, v0_bf, v0_pad, wt, b_row,
                          n, n_pad, d_pad, tm, tn, v1_dtype):
    grid = (n_pad // tm, n_pad // tn)
    kernel = functools.partial(_msg_first_step_kernel, n=n, tm=tm, tn=tn)
    return pl.pallas_call(
        kernel,
        out_shape=(jax.ShapeDtypeStruct((n_pad, n_pad), jnp.bfloat16),
                   jax.ShapeDtypeStruct((n_pad, d_pad), v1_dtype)),
        grid=grid,
        in_specs=[
            pl.BlockSpec(memory_space=pltpu.MemorySpace.SMEM),      # scalar params
            pl.BlockSpec((tm, tn), lambda i, j: (i, j)),            # r (unpadded)
            pl.BlockSpec((tm, tn), lambda i, j: (i, j)),            # adj (unpadded)
            pl.BlockSpec((n_pad, d_pad), lambda i, j: (0, 0)),      # v0 bf16, resident
            pl.BlockSpec((tm, d_pad), lambda i, j: (i, 0)),         # v0 f32 row tile
            pl.BlockSpec((d_pad, d_pad), lambda i, j: (0, 0)),      # W^T (f32)
            pl.BlockSpec((1, d_pad), lambda i, j: (0, 0)),          # bias row
        ],
        out_specs=(pl.BlockSpec((tm, tn), lambda i, j: (i, j)),     # msg
                   pl.BlockSpec((tm, d_pad), lambda i, j: (i, 0))),  # v after step 1
        scratch_shapes=[pltpu.VMEM((tm, d_pad), jnp.float32)],
        compiler_params=pltpu.CompilerParams(
            dimension_semantics=("parallel", "arbitrary"),
            vmem_limit_bytes=_VMEM_LIMIT),
    )(params, r, adj, v0_bf, v0_pad, wt, b_row)


# ---------------------------------------------------------------------------
# Tiled path, kernel B: one message-passing step
#   v_next = relu((msg @ v + v0) @ W^T + b)
#   grid = (dst-row tiles "parallel", src reduction tiles "arbitrary", last)
#   v (current) is VMEM-resident (whole-array bf16 block, constant index map).
# ---------------------------------------------------------------------------
def _step_kernel(msg_ref, vbf_ref, v0r_ref, wt_ref, b_ref, out_ref, acc_ref,
                 *, tk):
    k = pl.program_id(1)

    @pl.when(k == 0)
    def _init():
        acc_ref[...] = jnp.zeros_like(acc_ref)

    off = pl.multiple_of(k * tk, _LANE)
    acc_ref[...] += jnp.dot(msg_ref[...], vbf_ref[pl.ds(off, tk), :],
                            preferred_element_type=jnp.float32)

    @pl.when(k == pl.num_programs(1) - 1)
    def _finalize():
        pre = jnp.dot(acc_ref[...] + v0r_ref[...], wt_ref[...],
                      preferred_element_type=jnp.float32) + b_ref[...]
        out_ref[...] = jnp.maximum(pre, 0.0).astype(out_ref.dtype)


def _one_step(msg, v_bf, v0_pad, wt, b_row, out_dtype, n_pad, d_pad, tm, tk):
    grid = (n_pad // tm, n_pad // tk)
    return pl.pallas_call(
        functools.partial(_step_kernel, tk=tk),
        out_shape=jax.ShapeDtypeStruct((n_pad, d_pad), out_dtype),
        grid=grid,
        in_specs=[
            pl.BlockSpec((tm, tk), lambda i, k: (i, k),
                         pipeline_mode=pl.Buffered(3)),             # msg stream
            pl.BlockSpec((n_pad, d_pad), lambda i, k: (0, 0)),      # v bf16, resident
            pl.BlockSpec((tm, d_pad), lambda i, k: (i, 0)),         # v0 f32 row tile
            pl.BlockSpec((d_pad, d_pad), lambda i, k: (0, 0)),      # W^T (f32)
            pl.BlockSpec((1, d_pad), lambda i, k: (0, 0)),          # bias row
        ],
        out_specs=pl.BlockSpec((tm, d_pad), lambda i, k: (i, 0)),
        scratch_shapes=[pltpu.VMEM((tm, d_pad), jnp.float32)],
        compiler_params=pltpu.CompilerParams(
            dimension_semantics=("parallel", "arbitrary"),
            vmem_limit_bytes=_VMEM_LIMIT),
    )(msg, v_bf, v0_pad, wt, b_row)


# ---------------------------------------------------------------------------
# Wrapper
# ---------------------------------------------------------------------------
@functools.partial(jax.jit, static_argnames=("depth", "force_tiled"))
def distance_conv(r, adj, v, w, b, rs, sigma, rc, *, depth, force_tiled=False):
    """r, adj: [N, N]; v: [N, D]; w: [D, D] (torch [out, in]); b: [D]."""
    f32 = jnp.float32
    N, D = v.shape
    r = r.astype(f32)
    adj = adj.astype(f32)
    v = v.astype(f32)

    if depth == 0:
        return v

    rs_ = jnp.asarray(rs, f32)
    sigma_ = jnp.asarray(sigma, f32)
    rc_ = jnp.asarray(rc, f32)
    params = jnp.stack([rs_,
                        -1.0 / jnp.square(sigma_),
                        jnp.float32(np.pi) / rc_,
                        rc_]).astype(f32)
    wt = jnp.transpose(w).astype(f32)        # W^T, hoisted out of the depth loop
    b_row = b.astype(f32).reshape(1, D)

    # ---- fast path: everything resident in VMEM, single kernel ----
    fast_bytes = (N * N * (4 + 4 + 4 + 2) + N * D * (4 + 2 + 4 + 4) + D * D * 4)
    if (not force_tiled) and fast_bytes <= _FAST_PATH_BYTES:
        return _distance_conv_resident(params, r, adj, v, wt, b_row, depth)

    # ---- tiled path ----
    n_pad = _round_up(max(N, _LANE), _LANE)
    d_pad = _round_up(max(D, _LANE), _LANE)
    tm = _divisor_tile(n_pad, 512, min_tiles=2)   # dst rows (>=2 tiles for v7x megacore)
    tn = _divisor_tile(n_pad, 512, min_tiles=1)   # src cols (msg) / reduction tile
    tk = tn

    # Zero-padded dense operands (inert: msg is masked to zero outside [:N,:N],
    # padded W/b entries are zero, result is sliced back to [:N,:D]).
    v0_pad = jnp.zeros((n_pad, d_pad), f32).at[:N, :D].set(v)
    v0_bf = v0_pad.astype(jnp.bfloat16)
    wt_pad = jnp.zeros((d_pad, d_pad), f32).at[:D, :D].set(wt)
    b_pad = jnp.zeros((1, d_pad), f32).at[0, :D].set(b.astype(f32))

    # r/adj stream UNPADDED (edge tiles masked in-kernel) -- this removes the
    # full [n_pad, n_pad] f32 pad write + re-read.  Only fall back to explicit
    # padding if a tile would exceed the array itself (tiny N forced here).
    r_in, adj_in = r, adj
    if tm > N or tn > N:
        r_in = jnp.zeros((n_pad, n_pad), f32).at[:N, :N].set(r)
        adj_in = jnp.zeros((n_pad, n_pad), f32).at[:N, :N].set(adj)

    v1_dtype = f32 if depth == 1 else jnp.bfloat16
    msg, vc = _fused_msg_first_step(params, r_in, adj_in, v0_bf, v0_pad,
                                    wt_pad, b_pad, N, n_pad, d_pad, tm, tn,
                                    v1_dtype)
    for t in range(1, depth):
        out_dtype = f32 if t == depth - 1 else jnp.bfloat16
        vc = _one_step(msg, vc, v0_pad, wt_pad, b_pad, out_dtype,
                       n_pad, d_pad, tm, tk)
    return vc[:N, :D]


def distance_conv_ref(r, adj, v, w, b, rs, sigma, rc, depth):
    """Pure-JAX f32 reference mirroring the PyTorch/DGL semantics."""
    f = (jnp.exp(-jnp.square(r - rs) / jnp.square(sigma))
         * 0.5 * jnp.cos(np.pi * r / rc)
         * (r < rc).astype(r.dtype)) * adj
    vc = v
    for _ in range(depth):
        svf = f @ vc
        vc = jax.nn.relu((svf + v) @ w.T + b)
    return vc


if __name__ == "__main__":
    key = jax.random.PRNGKey(0)
    k_rs, k_sig, k_w, k_b, k_v, k_r, k_adj = jax.random.split(key, 7)

    rc, depth = 3.0, 3

    # ----- small case (exercises the VMEM-resident fast path) -----
    N, dim = 16, 32
    rs = float(jax.random.uniform(k_rs, ()))                      # torch.rand(1)
    sigma = float(jax.random.uniform(k_sig, (), minval=0.3, maxval=1.0))
    bound = 1.0 / np.sqrt(dim)
    A_weight = jax.random.uniform(k_w, (dim, dim), minval=-bound, maxval=bound)
    A_bias = jax.random.uniform(k_b, (dim,), minval=-bound, maxval=bound)

    v = jax.random.normal(k_v, (N, dim), jnp.float32)
    r = jax.random.uniform(k_r, (N, N), minval=0.0, maxval=2.0 * rc)
    adj = (jax.random.uniform(k_adj, (N, N)) < 0.3).astype(jnp.float32)
    adj = adj * (1.0 - jnp.eye(N, dtype=jnp.float32))             # no self loops

    out = distance_conv(r, adj, v, A_weight, A_bias, rs, sigma, rc, depth=depth)
    out = jax.block_until_ready(out)
    ref = distance_conv_ref(r, adj, v, A_weight, A_bias, rs, sigma, rc, depth)
    np.testing.assert_allclose(np.asarray(out), np.asarray(ref),
                               rtol=5e-2, atol=5e-2)

    # ----- larger case (exercises the tiled two-kernel path + edge masking) -----
    N2, dim2 = 700, 40
    key2 = jax.random.PRNGKey(1)
    k_w2, k_b2, k_v2, k_r2, k_adj2 = jax.random.split(key2, 5)
    bound2 = 1.0 / np.sqrt(dim2)
    w2 = jax.random.uniform(k_w2, (dim2, dim2), minval=-bound2, maxval=bound2)
    b2 = jax.random.uniform(k_b2, (dim2,), minval=-bound2, maxval=bound2)
    v2 = jax.random.normal(k_v2, (N2, dim2), jnp.float32)
    r2 = jax.random.uniform(k_r2, (N2, N2), minval=0.0, maxval=2.0 * rc)
    adj2 = (jax.random.uniform(k_adj2, (N2, N2)) < 0.05).astype(jnp.float32)
    adj2 = adj2 * (1.0 - jnp.eye(N2, dtype=jnp.float32))

    out2 = distance_conv(r2, adj2, v2, w2, b2, rs, sigma, rc,
                         depth=depth, force_tiled=True)
    out2 = jax.block_until_ready(out2)
    ref2 = np.asarray(distance_conv_ref(r2, adj2, v2, w2, b2, rs, sigma, rc, depth))
    # bf16 MXU operands -> scale-aware tolerance (relu-boundary flips scale with
    # the pre-activation magnitude, not with the clamped zero output).
    atol2 = 5e-2 * (np.abs(ref2).mean() + 1.0)
    np.testing.assert_allclose(np.asarray(out2), ref2, rtol=5e-2, atol=atol2)

    print("KERNEL_OK")
</pallas_src>

<mosaic_0001>
module attributes {stable_mosaic.version = 11 : i64} {
  func.func @_fused_resident_kernel(%arg0: memref<4xf32, #tpu.memory_space<smem>>, %arg1: memref<16x16xf32, #tpu.memory_space<vmem>>, %arg2: memref<16x16xf32, #tpu.memory_space<vmem>>, %arg3: memref<16x32xf32, #tpu.memory_space<vmem>>, %arg4: memref<32x32xf32, #tpu.memory_space<vmem>>, %arg5: memref<1x32xf32, #tpu.memory_space<vmem>>, %arg6: memref<16x32xf32, #tpu.memory_space<vmem>>) attributes {dimension_semantics = [], scalar_prefetch = 0 : i64, scratch_operands = 0 : i64, tpu.core_type = #tpu.core_type<tc>} {
    %c0 = arith.constant 0 : index
    %0 = memref.load %arg0[%c0] : memref<4xf32, #tpu.memory_space<smem>>
    %c1 = arith.constant 1 : index
    %1 = memref.load %arg0[%c1] : memref<4xf32, #tpu.memory_space<smem>>
    %c2 = arith.constant 2 : index
    %2 = memref.load %arg0[%c2] : memref<4xf32, #tpu.memory_space<smem>>
    %c3 = arith.constant 3 : index
    %3 = memref.load %arg0[%c3] : memref<4xf32, #tpu.memory_space<smem>>
    %c0_0 = arith.constant 0 : index
    %c0_1 = arith.constant 0 : index
    %4 = vector.load %arg1[%c0_0, %c0_1] : memref<16x16xf32, #tpu.memory_space<vmem>>, vector<16x16xf32>
    %5 = vector.broadcast %0 : f32 to vector<16x16xf32>
    %6 = arith.subf %4, %5 : vector<16x16xf32>
    %7 = arith.mulf %6, %6 : vector<16x16xf32>
    %8 = vector.broadcast %1 : f32 to vector<16x16xf32>
    %9 = arith.mulf %7, %8 : vector<16x16xf32>
    %10 = math.exp %9 : vector<16x16xf32>
    %11 = vector.broadcast %2 : f32 to vector<16x16xf32>
    %12 = arith.mulf %4, %11 : vector<16x16xf32>
    %13 = math.cos %12 : vector<16x16xf32>
    %cst = arith.constant 5.000000e-01 : f32
    %14 = vector.broadcast %cst : f32 to vector<16x16xf32>
    %15 = arith.mulf %14, %13 : vector<16x16xf32>
    %16 = arith.mulf %10, %15 : vector<16x16xf32>
    %17 = vector.broadcast %3 : f32 to vector<16x16xf32>
    %18 = arith.cmpf olt, %4, %17 : vector<16x16xf32>
    %c0_2 = arith.constant 0 : index
    %c0_3 = arith.constant 0 : index
    %19 = vector.load %arg2[%c0_2, %c0_3] : memref<16x16xf32, #tpu.memory_space<vmem>>, vector<16x16xf32>
    %20 = arith.mulf %16, %19 : vector<16x16xf32>
    %cst_4 = arith.constant 0.000000e+00 : f32
    %21 = vector.broadcast %cst_4 : f32 to vector<16x16xf32>
    %22 = arith.select %18, %20, %21 : vector<16x16xi1>, vector<16x16xf32>
    %23 = arith.truncf %22 : vector<16x16xf32> to vector<16x16xbf16>
    %c0_5 = arith.constant 0 : index
    %c0_6 = arith.constant 0 : index
    %24 = vector.load %arg3[%c0_5, %c0_6] : memref<16x32xf32, #tpu.memory_space<vmem>>, vector<16x32xf32>
    %c0_7 = arith.constant 0 : index
    %c0_8 = arith.constant 0 : index
    %25 = vector.load %arg4[%c0_7, %c0_8] : memref<32x32xf32, #tpu.memory_space<vmem>>, vector<32x32xf32>
    %c0_9 = arith.constant 0 : index
    %c0_10 = arith.constant 0 : index
    %26 = vector.load %arg5[%c0_9, %c0_10] : memref<1x32xf32, #tpu.memory_space<vmem>>, vector<1x32xf32>
    %27 = arith.truncf %24 : vector<16x32xf32> to vector<16x32xbf16>
    %cst_11 = arith.constant dense<0.000000e+00> : vector<16x32xf32>
    %28 = tpu.matmul %23, %27, %cst_11 {dimension_numbers = #tpu.dot_dimension_numbers<[1], [0], [0], [1], [0, 0, 1, 1], [], []>} : vector<16x16xbf16>, vector<16x32xbf16>, vector<16x32xf32> -> vector<16x32xf32>
    %29 = arith.addf %28, %24 : vector<16x32xf32>
    %cst_12 = arith.constant dense<0.000000e+00> : vector<16x32xf32>
    %30 = tpu.matmul %29, %25, %cst_12 {dimension_numbers = #tpu.dot_dimension_numbers<[1], [0], [0], [1], [0, 0, 1, 1], [], []>} : vector<16x32xf32>, vector<32x32xf32>, vector<16x32xf32> -> vector<16x32xf32>
    %31 = vector.broadcast %26 : vector<1x32xf32> to vector<16x32xf32>
    %32 = arith.addf %30, %31 : vector<16x32xf32>
    %cst_13 = arith.constant 0.000000e+00 : f32
    %33 = vector.broadcast %cst_13 : f32 to vector<16x32xf32>
    %34 = arith.maximumf %32, %33 : vector<16x32xf32>
    %35 = arith.truncf %34 : vector<16x32xf32> to vector<16x32xbf16>
    %cst_14 = arith.constant dense<0.000000e+00> : vector<16x32xf32>
    %36 = tpu.matmul %23, %35, %cst_14 {dimension_numbers = #tpu.dot_dimension_numbers<[1], [0], [0], [1], [0, 0, 1, 1], [], []>} : vector<16x16xbf16>, vector<16x32xbf16>, vector<16x32xf32> -> vector<16x32xf32>
    %37 = arith.addf %36, %24 : vector<16x32xf32>
    %cst_15 = arith.constant dense<0.000000e+00> : vector<16x32xf32>
    %38 = tpu.matmul %37, %25, %cst_15 {dimension_numbers = #tpu.dot_dimension_numbers<[1], [0], [0], [1], [0, 0, 1, 1], [], []>} : vector<16x32xf32>, vector<32x32xf32>, vector<16x32xf32> -> vector<16x32xf32>
    %39 = vector.broadcast %26 : vector<1x32xf32> to vector<16x32xf32>
    %40 = arith.addf %38, %39 : vector<16x32xf32>
    %cst_16 = arith.constant 0.000000e+00 : f32
    %41 = vector.broadcast %cst_16 : f32 to vector<16x32xf32>
    %42 = arith.maximumf %40, %41 : vector<16x32xf32>
    %43 = arith.truncf %42 : vector<16x32xf32> to vector<16x32xbf16>
    %cst_17 = arith.constant dense<0.000000e+00> : vector<16x32xf32>
    %44 = tpu.matmul %23, %43, %cst_17 {dimension_numbers = #tpu.dot_dimension_numbers<[1], [0], [0], [1], [0, 0, 1, 1], [], []>} : vector<16x16xbf16>, vector<16x32xbf16>, vector<16x32xf32> -> vector<16x32xf32>
    %45 = arith.addf %44, %24 : vector<16x32xf32>
    %cst_18 = arith.constant dense<0.000000e+00> : vector<16x32xf32>
    %46 = tpu.matmul %45, %25, %cst_18 {dimension_numbers = #tpu.dot_dimension_numbers<[1], [0], [0], [1], [0, 0, 1, 1], [], []>} : vector<16x32xf32>, vector<32x32xf32>, vector<16x32xf32> -> vector<16x32xf32>
    %47 = vector.broadcast %26 : vector<1x32xf32> to vector<16x32xf32>
    %48 = arith.addf %46, %47 : vector<16x32xf32>
    %cst_19 = arith.constant 0.000000e+00 : f32
    %49 = vector.broadcast %cst_19 : f32 to vector<16x32xf32>
    %50 = arith.maximumf %48, %49 : vector<16x32xf32>
    %c0_20 = arith.constant 0 : index
    %c0_21 = arith.constant 0 : index
    %51 = vector.load %arg6[%c0_20, %c0_21] : memref<16x32xf32, #tpu.memory_space<vmem>>, vector<16x32xf32>
    tpu.vector_store %arg6[%c0_20, %c0_21], %50 {strides = array<i32>} : memref<16x32xf32, #tpu.memory_space<vmem>>, vector<16x32xf32>,
    return
  }
}

</mosaic_0001>

<bundles_post_ra>
// kernel: distance_conv.1
= control target key start
LH: loop header
LB: loop body
LE: loop exit
PB: predicated region body
PF: predicated region fallthrough
CT: control target
= control target key end

     0   :  { %11 = vsyncpa [#allocation4], 0  ;;  %s944_s0 = inlined_call_operand.vmem [shape: f32[4], index: 0, kind: input, shape index: {}]   ;;  %s945_s1 = inlined_call_operand.vmem [shape: f32[16,16], index: 1, kind: input, shape index: {}]   ;;  %s946_s2 = inlined_call_operand.vmem [shape: f32[16,16], index: 2, kind: input, shape index: {}]   ;;  %s947_s3 = inlined_call_operand.vmem [shape: f32[16,32], index: 3, kind: input, shape index: {}]   ;;  %s948_s4 = inlined_call_operand.vmem [shape: f32[32,32], index: 4, kind: input, shape index: {}]   ;;  %s949_s5 = inlined_call_operand.vmem [shape: f32[1,32], index: 5, kind: input, shape index: {}]   ;;  %s950_s6 = inlined_call_operand.hbm [shape: f32[16,32], index: 6, kind: output, shape index: {}]  }
   0x1   :  { %12 = vsyncpa [#allocation3], 0  ;;  %s18_s23 = sshll.u32 %s944_s0, 4  ;;  %s629_s24 = smov [#allocation2]   ;;  %s19_s23 = int_to_ptr.vmem [resolvable:$true] %s18_s23 }
   0x2   :  { %21 = dma.vmem_to_smem %s19_s23, 16, %s629_s24, [#allocation4]  }
   0x3   :  { %625 = dma.done.wait [#allocation4], 16  }
   0x4   :  { %626 = vsyncadd [#allocation4], 4294967280 }
   0x5   :  { %36 = sfence }
   0x6   :  { %v681_v0 = vld [vmem:[%s947_s3] sm:$0xff]  ;;  %v686_v1 = vld [vmem:[%s947_s3 + $0x8] sm:$0xff]  ;;  %s556_s0 = sld [smem:[#allocation2 + $0x2]]  ;;  %v630_v29 = vmov 683565275   ;;  %s542_s25 = sshll.u32 %s950_s6, 4  ;;  %s543_s25 = int_to_ptr.hbm [resolvable:$true] %s542_s25 }
   0x7   :  { %v388_v2 = vpack.c.bf16 %v686_v1, %v681_v0  ;;  %v693_v3 = vld [vmem:[%s945_s1] sm:$0xff]  ;;  %v698_v4 = vld [vmem:[%s945_s1 + $0x8] sm:$0xff]  ;;  %v631_v31 = vmov 2475754826   ;;  %v632_v33 = vmov 2131351028  }
   0x8   :  { %v633_v35 = vmov 2102212464   ;;  %v634_v37 = vmov 920167782   ;;  %v635_v46 = vmov 1326507024  }
   0x9   :  { %400 = vmatpush.bf16.msra.mxu0 %v388_v2  ;;  %s854_s1 = sld [smem:[#allocation2]]  ;;  %s638_s26 = smov 128  }
   0xa   :  { %s859_s3 = sld [smem:[#allocation2 + $0x1]]  ;;  %s639_s27 = smov 8  }
   0xb   :  { %s557_s13 = sld [smem:[#allocation2 + $0x3]] }
   0xc   :  { %v56_v5 = vstv %s556_s0 }
   0xd   :  { %v701_v6 = vmul.f32 %v56_v5, %v693_v3  ;;  %v704_v7 = vmul.f32 %v56_v5, %v698_v4 }
   0xf   :  { %v59_v8 = vand.u32 2147483647, %v701_v6  ;;  %v62_v9 = vand.u32 2139095040, %v701_v6  ;;  %v216_v10 = vand.u32 2139095040, %v704_v7  ;;  %v213_v11 = vand.u32 2147483647, %v704_v7 }
  0x11   :  { %v63_v12 = vshrl.u32 %v62_v9, 23  ;;  %v66_v13 = vand.u32 8388607, %v59_v8  ;;  %v217_v14 = vshrl.u32 %v216_v10, 23  ;;  %v220_v18 = vand.u32 8388607, %v213_v11 }
  0x13   :  { %v558_v15 = vadd.s32 4294967169, %v63_v12  ;;  %v561_v16 = vadd.s32 4294967169, %v217_v14  ;;  %v67_v17 = vor.u32 8388608, %v66_v13  ;;  %v221_v23 = vor.u32 8388608, %v220_v18 }
  0x15   :  { %v69_v19 = vadd.s32 1, %v558_v15  ;;  %v223_v20 = vadd.s32 1, %v561_v16  ;;  %v714_v22 = vshll.u32 %v67_v17, 8  ;;  %v724_v40 = vshll.u32 %v221_v23, 8 }
  0x17   :  { %vm70_vm0 = vcmp.gt.s32.totalorder %v69_v19, 0  ;;  %vm224_vm1 = vcmp.gt.s32.totalorder %v223_v20, 0  ;;  %v108_v39 = vand.u32 65535, %v714_v22  ;;  %v109_v44 = vshrl.u32 %v714_v22, 16 }
  0x18   :  { %v71_v21 = vsel %vm70_vm0, %v69_v19, 0  ;;  %v225_v24 = vsel %vm224_vm1, %v223_v20, 0 }
  0x19   :  { %v73_v25 = vand.u32 31, %v71_v21  ;;  %v716_v26 = vshrl.u32 %v71_v21, 5  ;;  %v718_v27 = vand.u32 31, %v225_v24  ;;  %v742_v57 = vshrl.u32 %v225_v24, 5 }
  0x1b   :  { %v74_v28 = vsub.s32 32, %v73_v25  ;;  %v76_v30 = vshll.u32 %v630_v29, %v73_v25  ;;  %v79_v32 = vshll.u32 %v631_v31, %v73_v25  ;;  %v82_v34 = vshll.u32 %v632_v33, %v73_v25 }
  0x1c   :  { %v85_v36 = vshll.u32 %v633_v35, %v73_v25  ;;  %v88_v38 = vshll.u32 %v634_v37, %v73_v25  ;;  %vm91_vm2 = vcmp.lt.s32.totalorder %v716_v26, 1  ;;  %vm94_vm3 = vcmp.lt.s32.totalorder %v716_v26, 4 }
  0x1d   :  { %v77_v41 = vshrl.u32 %v631_v31, %v74_v28  ;;  %v80_v42 = vshrl.u32 %v632_v33, %v74_v28  ;;  %v83_v43 = vshrl.u32 %v633_v35, %v74_v28  ;;  %v86_v45 = vshrl.u32 %v634_v37, %v74_v28 }
  0x1e   :  { %v89_v47 = vshrl.u32 %v635_v46, %v74_v28  ;;  %v733_v51 = vsub.s32 32, %v718_v27  ;;  %v75_v52 = vshrl.u32 %v630_v29, %v74_v28  ;;  %vm93_vm4 = vcmp.lt.s32.totalorder %v716_v26, 3 }
  0x1f   :  { %v78_v48 = vor.u32 %v77_v41, %v76_v30  ;;  %v81_v49 = vor.u32 %v80_v42, %v79_v32  ;;  %v84_v50 = vor.u32 %v83_v43, %v82_v34  ;;  %v87_v53 = vor.u32 %v86_v45, %v85_v36 }
  0x20   :  { %v90_v54 = vor.u32 %v89_v47, %v88_v38  ;;  %vm92_vm5 = vcmp.lt.s32.totalorder %v716_v26, 2  ;;  %v230_v60 = vshll.u32 %v630_v29, %v718_v27  ;;  %v233_v61 = vshll.u32 %v631_v31, %v718_v27 }
  0x21   :  { %v99_v55 = vsel %vm91_vm2, %v78_v48, %v81_v49  ;;  %v103_v56 = vsel %vm91_vm2, %v81_v49, %v84_v50  ;;  %v100_v58 = vsel %vm94_vm3, %v87_v53, 920167782  ;;  %v96_v62 = vsel %vm94_vm3, %v84_v50, 2102212464 }
  0x22   :  { %v104_v59 = vsel %vm94_vm3, %v90_v54, 1326507024  ;;  %v101_v63 = vsel %vm93_vm4, %v84_v50, %v100_v58  ;;  %v231_v5 = vshrl.u32 %v631_v31, %v733_v51  ;;  %v95_v9 = vsel %vm91_vm2, %v75_v52, %v78_v48 }
  0x23   :  { %v105_v2 = vsel %vm93_vm4, %v87_v53, %v104_v59  ;;  %v102_v10 = vsel %vm92_vm5, %v99_v55, %v101_v63  ;;  %v234_v13 = vshrl.u32 %v632_v33, %v733_v51  ;;  %v97_v18 = vsel %vm93_vm4, %v81_v49, %v96_v62 }
  0x24   :  { %v106_v12 = vsel %vm92_vm5, %v103_v56, %v105_v2  ;;  %v132_v16 = vand.u32 65535, %v102_v10  ;;  %v133_v17 = vshrl.u32 %v102_v10, 16  ;;  %v767_v19 = vor.u32 %v231_v5, %v230_v60 }
  0x25   :  { %v110_v14 = vand.u32 65535, %v106_v12  ;;  %v111_v15 = vshrl.u32 %v106_v12, 16  ;;  %v769_v20 = vor.u32 %v234_v13, %v233_v61  ;;  %v236_v21 = vshll.u32 %v632_v33, %v718_v27 }
  0x26   :  { %v237_v28 = vshrl.u32 %v633_v35, %v733_v51  ;;  %v134_v31 = vmul.u32 %v132_v16, %v108_v39  ;;  %v135_v32 = vmul.u32 %v133_v17, %v108_v39  ;;  %v136_v34 = vmul.u32 %v132_v16, %v109_v44 }
  0x27   :  { %v112_v23 = vmul.u32 %v110_v14, %v108_v39  ;;  %v113_v24 = vmul.u32 %v111_v15, %v108_v39  ;;  %v114_v25 = vmul.u32 %v110_v14, %v109_v44  ;;  %v115_v30 = vmul.u32 %v111_v15, %v109_v44 }
  0x28   :  { %v137_v42 = vmul.u32 %v133_v17, %v109_v44  ;;  %v138_v45 = vshll.u32 %v135_v32, 16  ;;  %v139_v47 = vshrl.u32 %v135_v32, 16  ;;  %v140_v48 = vshll.u32 %v136_v34, 16 }
  0x29   :  { %v116_v36 = vshll.u32 %v113_v24, 16  ;;  %v117_v38 = vshrl.u32 %v113_v24, 16  ;;  %v118_v41 = vshll.u32 %v114_v25, 16  ;;  %v119_v43 = vshrl.u32 %v114_v25, 16 }
  0x2a   :  { %v141_v49 = vshrl.u32 %v136_v34, 16  ;;  %v239_v50 = vshll.u32 %v633_v35, %v718_v27  ;;  %v636_v52 = vmov 0   ;;  %vm142_vm7 = vc.u32 %v134_v31, %v138_v45 }
  0x2b   :  { %vm120_vm6 = vc.u32 %v112_v23, %v116_v36  ;;  %v122_v33 = vadd.s32 %v116_v36, %v112_v23  ;;  %v144_v39 = vadd.s32 %v138_v45, %v134_v31  ;;  %v240_v54 = vshrl.u32 %v634_v37, %v733_v51 }
  0x2c   :  { %v121_v53 = vsel %vm120_vm6, 1, %v636_v52  ;;  %v143_v44 = vsel %vm142_vm7, 1, %v636_v52  ;;  %v242_v56 = vshll.u32 %v634_v37, %v718_v27  ;;  %v238_v35 = vor.u32 %v237_v28, %v236_v21 }
  0x2d   :  { %v123_v55 = vadd.s32 %v121_v53, %v115_v30  ;;  %vm124_vm8 = vc.u32 %v122_v33, %v118_v41  ;;  %v145_v59 = vadd.s32 %v143_v44, %v137_v42  ;;  %vm146_vm9 = vc.u32 %v144_v39, %v140_v48 }
  0x2e   :  { %v125_v58 = vsel %vm124_vm8, 1, %v636_v52  ;;  %v147_v61 = vsel %vm146_vm9, 1, %v636_v52  ;;  %v241_v62 = vor.u32 %v240_v54, %v239_v50  ;;  %v243_v63 = vshrl.u32 %v635_v46, %v733_v51 }
  0x2f   :  { %v127_v60 = vadd.s32 %v125_v58, %v123_v55  ;;  %v786_v2 = vadd.s32 %v144_v39, %v140_v48  ;;  %v149_v5 = vadd.s32 %v147_v61, %v145_v59  ;;  %vm245_vm10 = vcmp.lt.s32.totalorder %v742_v57, 1 }
  0x30   :  { %vm247_vm11 = vcmp.lt.s32.totalorder %v742_v57, 3  ;;  %v244_v37 = vor.u32 %v243_v63, %v242_v56  ;;  %vm246_vm12 = vcmp.lt.s32.totalorder %v742_v57, 2  ;;  %vm248_vm13 = vcmp.lt.s32.totalorder %v742_v57, 4 }
  0x31   :  { %v128_v27 = vadd.s32 %v127_v60, %v117_v38  ;;  %v98_v10 = vsel %vm92_vm5, %v95_v9, %v97_v18  ;;  %v150_v12 = vadd.s32 %v149_v5, %v139_v47  ;;  %v253_v46 = vsel %vm245_vm10, %v767_v19, %v769_v20 }
  0x32   :  { %v254_v13 = vsel %vm248_vm13, %v241_v62, 920167782  ;;  %v257_v16 = vsel %vm245_vm10, %v769_v20, %v238_v35  ;;  %v262_v26 = vand.u32 65535, %v724_v40  ;;  %v258_v18 = vsel %vm248_vm13, %v244_v37, 1326507024 }
  0x33   :  { %v800_v14 = vadd.s32 %v128_v27, %v119_v43  ;;  %v255_v15 = vsel %vm247_vm11, %v238_v35, %v254_v13  ;;  %v151_v9 = vadd.s32 %v150_v12, %v141_v49  ;;  %v263_v21 = vshrl.u32 %v724_v40, 16 }
  0x34   :  { %v256_v17 = vsel %vm246_vm12, %v253_v46, %v255_v15  ;;  %v152_v23 = vmul.u32 %v714_v22, %v98_v10  ;;  %v259_v24 = vsel %vm247_vm11, %v241_v62, %v258_v18  ;;  %v229_v38 = vshrl.u32 %v630_v29, %v733_v51 }
  0x35   :  { %vm154_vm14 = vc.u32 %v800_v14, %v786_v2  ;;  %v286_v25 = vand.u32 65535, %v256_v17  ;;  %v155_v28 = vadd.s32 1, %v151_v9  ;;  %v260_v30 = vsel %vm246_vm12, %v257_v16, %v259_v24 }
  0x36   :  { %v287_v31 = vshrl.u32 %v256_v17, 16  ;;  %v264_v32 = vand.u32 65535, %v260_v30  ;;  %v265_v34 = vshrl.u32 %v260_v30, 16  ;;  %v250_v50 = vsel %vm248_vm13, %v238_v35, 2102212464 }
  0x37   :  { %v156_v36 = vsel %vm154_vm14, %v155_v28, %v151_v9  ;;  %v290_v22 = vmul.u32 %v286_v25, %v263_v21  ;;  %v288_v47 = vmul.u32 %v286_v25, %v262_v26  ;;  %v249_v54 = vsel %vm245_vm10, %v229_v38, %v767_v19 }
  0x38   :  { %v289_v41 = vmul.u32 %v287_v31, %v262_v26  ;;  %v157_v42 = vadd.s32 %v156_v36, %v152_v23  ;;  %v266_v43 = vmul.u32 %v264_v32, %v262_v26  ;;  %v267_v45 = vmul.u32 %v265_v34, %v262_v26 }
  0x39   :  { %v268_v48 = vmul.u32 %v264_v32, %v263_v21  ;;  %v269_v53 = vmul.u32 %v265_v34, %v263_v21  ;;  %v291_v29 = vmul.u32 %v287_v31, %v263_v21  ;;  %v294_v51 = vshll.u32 %v290_v22, 16 }
  0x3a   :  { %v292_v33 = vshll.u32 %v289_v41, 16  ;;  %v158_v49 = vadd.s32 536870912, %v157_v42  ;;  %v270_v39 = vshll.u32 %v267_v45, 16  ;;  %v251_v58 = vsel %vm247_vm11, %v769_v20, %v250_v50 }
  0x3b   :  { %v272_v55 = vshll.u32 %v268_v48, 16  ;;  %v271_v19 = vshrl.u32 %v267_v45, 16  ;;  %v293_v5 = vshrl.u32 %v289_v41, 16  ;;  %v273_v10 = vshrl.u32 %v268_v48, 16 }
  0x3c   :  { %v827_v44 = vshrl.u32 %v158_v49, 30  ;;  %vm274_vm15 = vc.u32 %v266_v43, %v270_v39  ;;  %v276_v56 = vadd.s32 %v270_v39, %v266_v43  ;;  %vm296_vm0 = vc.u32 %v288_v47, %v292_v33 }
  0x3d   :  { %v275_v59 = vsel %vm274_vm15, 1, %v636_v52  ;;  %v297_v35 = vsel %vm296_vm0, 1, %v636_v52  ;;  %v298_v60 = vadd.s32 %v292_v33, %v288_v47  ;;  %v295_v46 = vshrl.u32 %v290_v22, 16 }
  0x3e   :  { %v160_v61 = vshll.u32 %v827_v44, 30  ;;  %v277_v62 = vadd.s32 %v275_v59, %v269_v53  ;;  %vm278_vm1 = vc.u32 %v276_v56, %v272_v55  ;;  %v299_v27 = vadd.s32 %v297_v35, %v291_v29 }
  0x3f   :  { %v279_v63 = vsel %vm278_vm1, 1, %v636_v52  ;;  %vm300_vm2 = vc.u32 %v298_v60, %v294_v51  ;;  %v302_v26 = vadd.s32 %v298_v60, %v294_v51  ;;  %v252_v9 = vsel %vm246_vm12, %v249_v54, %v251_v58 }
  0x40   :  { %v161_v37 = vsub.s32 %v157_v42, %v160_v61  ;;  %v281_v12 = vadd.s32 %v279_v63, %v277_v62  ;;  %v301_v20 = vsel %vm300_vm2, 1, %v636_v52  ;;  %v306_v25 = vmul.u32 %v724_v40, %v252_v9 }
  0x41   :  { %v303_v13 = vadd.s32 %v301_v20, %v299_v27  ;;  %v153_v52 = vadd.s32 %v786_v2, %v800_v14  ;;  %vm61_vm7 = vcmp.lt.s32.totalorder %v701_v6, 0  ;;  %vm848_vm8 = vcmp.le.f32.partialorder %v59_v8, 0.7853982 }
  0x42   :  { %vm162_vm3 = vcmp.lt.s32.totalorder %v161_v37, 0  ;;  %v163_v15 = vsub.s32 0, %v161_v37  ;;  %v282_v16 = vadd.s32 %v281_v12, %v271_v19  ;;  %vm215_vm10 = vcmp.lt.s32.totalorder %v704_v7, 0 }
  0x43   :  { %v304_v17 = vadd.s32 %v303_v13, %v293_v5  ;;  %v44_v13 = vstv %s854_s1  ;;  %vm873_vm11 = vcmp.le.f32.partialorder %v213_v11, 0.7853982  ;;  %vm202_vm15 = vweird.f32 %v701_v6 }
  0x44   :  { %v164_v18 = vsel %vm162_vm3, %v163_v15, %v161_v37  ;;  %v283_v21 = vadd.s32 %v282_v16, %v273_v10  ;;  %v183_v10 = vsub.s32 4, %v827_v44  ;;  %vm356_vm3 = vweird.f32 %v704_v7 }
  0x45   :  { %v165_v23 = vclz %v164_v18  ;;  %v305_v24 = vadd.s32 %v304_v17, %v295_v46  ;;  %v45_v18 = vsub.f32 %v693_v3, %v44_v13 }
  0x46   :  { %vm308_vm4 = vc.u32 %v283_v21, %v302_v26  ;;  %v307_v59 = vadd.s32 %v302_v26, %v283_v21  ;;  %v184_v21 = vsel %vm61_vm7, %v183_v10, %v827_v44 }
  0x47   :  { %v559_v28 = vadd.s32 4294967294, %v165_v23  ;;  %v309_v30 = vadd.s32 1, %v305_v24 }
  0x49   :  { %vm560_vm5 = vcmp.lt.s32.totalorder %v559_v28, 0  ;;  %v310_v31 = vsel %vm308_vm4, %v309_v30, %v305_v24  ;;  %v186_v30 = vsel %vm848_vm8, 0, %v184_v21 }
  0x4a   :  { %v168_v32 = vsel %vm560_vm5, 0, %v559_v28  ;;  %v311_v34 = vadd.s32 %v310_v31, %v306_v25  ;;  %v47_v31 = vmul.f32 %v45_v18, %v45_v18 }
  0x4b   :  { %v169_v36 = vsub.s32 32, %v168_v32  ;;  %v170_v57 = vshll.u32 %v161_v37, %v168_v32  ;;  %v173_v38 = vsub.s32 4294967266, %v168_v32  ;;  %v49_v32 = vstv %s859_s3 }
  0x4c   :  { %v312_v41 = vadd.s32 536870912, %v311_v34  ;;  %v50_v11 = vmul.f32 %v49_v32, %v47_v31 }
  0x4d   :  { %v171_v22 = vshrl.u32 %v153_v52, %v169_v36  ;;  %v174_v42 = vadd.s32 127, %v173_v38  ;;  %v203_v38 = vand.u32 3, %v186_v30 }
  0x4e   :  { %v842_v43 = vshrl.u32 %v312_v41, 30  ;;  %v46_v41 = vsub.f32 %v698_v4, %v44_v13 }
  0x4f   :  { %v172_v45 = vor.u32 %v171_v22, %v170_v57  ;;  %v175_v40 = vshll.u32 %v174_v42, 23  ;;  %v883_v42 = vld [vmem:[%s948_s4 + $0x18] sm:$0xff]  ;;  %vm205_vm12 = vcmp.eq.s32.totalorder %v203_v38, 0  ;;  %vm208_vm13 = vcmp.eq.s32.totalorder %v203_v38, 2 }
  0x50   :  { %v314_v47 = vshll.u32 %v842_v43, 30  ;;  %429 = vmatpush.msra.mxu1 %v883_v42  ;;  %475 = vmatpush.msra.mxu3 %v883_v42  ;;  %vm204_vm14 = vcmp.lt.s32.totalorder %v203_v38, 2  ;;  %v584_v38 = vld [vmem:[%s949_s5] ss:$0 sm:$0xff] }
  0x51   :  { %v176_v48 = vor.u32 4788187, %v175_v40  ;;  %v179_v33 = vcvt.s32.f32 %v172_v45  ;;  %v888_v45 = vld [vmem:[%s948_s4 + $0x10] sm:$0xff]  ;;  %v337_v40 = vsub.s32 4, %v842_v43 }
  0x52   :  { %v315_v49 = vsub.s32 %v311_v34, %v314_v47  ;;  %430 = vmatpush.msra.mxu1 %v888_v45  ;;  %476 = vmatpush.msra.mxu3 %v888_v45 }
  0x53   :  { %v177_v2 = vand.u32 2147483647, %v176_v48  ;;  %v338_v39 = vsel %vm215_vm10, %v337_v40, %v842_v43 }
  0x54   :  { %vm316_vm6 = vcmp.lt.s32.totalorder %v315_v49, 0  ;;  %v317_v14 = vsub.s32 0, %v315_v49 }
  0x55   :  { %v180_v50 = vmul.f32 %v179_v33, %v177_v2  ;;  %v48_v2 = vmul.f32 %v46_v41, %v46_v41 }
  0x56   :  { %v318_v53 = vsel %vm316_vm6, %v317_v14, %v315_v49  ;;  %vm389_vm6 = vcmask 130048  }
  0x57   :  { %v181_v54 = vxor.u32 2147483648, %v180_v50  ;;  %v319_v55 = vclz %v318_v53  ;;  %v52_v53 = vmul.f32 1.442695, %v50_v11 }
  0x59   :  { %v182_v29 = vsel %vm61_vm7, %v181_v54, %v180_v50  ;;  %v562_v51 = vadd.s32 4294967294, %v319_v55  ;;  %585 = vpow2.f32 %v52_v53  ;;  %vm410_vm7 = vcmask 261120  }
  0x5a   :  { %v185_v56 = vsel %vm848_vm8, %v701_v6, %v182_v29 }
  0x5b   :  { %v187_v58 = vmul.f32 %v185_v56, %v185_v56  ;;  %vm563_vm9 = vcmp.lt.s32.totalorder %v562_v51, 0 }
  0x5c   :  { %v322_v8 = vsel %vm563_vm9, 0, %v562_v51 }
  0x5d   :  { %v188_v35 = vmul.f32 -0.001358992, %v187_v58  ;;  %v195_v60 = vmul.f32 -0.00019511016, %v187_v58  ;;  %v323_v61 = vsub.s32 32, %v322_v8  ;;  %v324_v19 = vshll.u32 %v315_v49, %v322_v8 }
  0x5e   :  { %v327_v62 = vsub.s32 4294967266, %v322_v8 }
  0x5f   :  { %v189_v63 = vadd.f32 0.041655596, %v188_v35  ;;  %v196_v5 = vadd.f32 0.008332121, %v195_v60  ;;  %v325_v27 = vshrl.u32 %v307_v59, %v323_v61 }
  0x60   :  { %v328_v37 = vadd.s32 127, %v327_v62 }
  0x61   :  { %v190_v12 = vmul.f32 %v189_v63, %v187_v58  ;;  %v197_v20 = vmul.f32 %v196_v5, %v187_v58  ;;  %v326_v46 = vor.u32 %v325_v27, %v324_v19 }
  0x62   :  { %v329_v15 = vshll.u32 %v328_v37, 23 }
  0x63   :  { %v191_v16 = vadd.f32 -0.4999988, %v190_v12  ;;  %v198_v26 = vadd.f32 -0.16666654, %v197_v20  ;;  %v333_v17 = vcvt.s32.f32 %v326_v46  ;;  %v586_v12 = vpop.eup %585 }
  0x64   :  { %v330_v9 = vor.u32 4788187, %v329_v15 }
  0x65   :  { %v199_v23 = vmul.f32 %v198_v26, %v187_v58  ;;  %v192_v24 = vmul.f32 %v191_v16, %v187_v58  ;;  %v340_v58 = vsel %vm873_vm11, 0, %v338_v39  ;;  %v374_v26 = vld [vmem:[%s946_s2] sm:$0xff] }
  0x66   :  { %v331_v25 = vand.u32 2147483647, %v330_v9  ;;  %v357_v19 = vand.u32 3, %v340_v58 }
  0x67   :  { %v200_v28 = vadd.f32 1.0, %v199_v23  ;;  %v193_v34 = vadd.f32 1.0, %v192_v24 }
  0x68   :  { %v334_v52 = vmul.f32 %v333_v17, %v331_v25  ;;  %vm362_vm0 = vcmp.eq.s32.totalorder %v357_v19, 2  ;;  %vm359_vm1 = vcmp.eq.s32.totalorder %v357_v19, 0  ;;  %vm358_vm2 = vcmp.lt.s32.totalorder %v357_v19, 2  ;;  %v375_v25 = vld [vmem:[%s946_s2 + $0x8] sm:$0xff] }
  0x69   :  { %v201_v36 = vmul.f32 %v200_v28, %v185_v56  ;;  %v209_v33 = vxor.u32 2147483648, %v193_v34  ;;  %v51_v56 = vmul.f32 %v49_v32, %v48_v2  ;;  %v371_v17 = vstv %s557_s13  ;;  %v384_v32 = vld [vmem:[%s948_s4 + $0x8] sm:$0xff] }
  0x6a   :  { %v335_v44 = vxor.u32 2147483648, %v334_v52  ;;  %vm372_vm4 = vcmp.lt.f32.partialorder %v693_v3, %v371_v17  ;;  %vm373_vm5 = vcmp.lt.f32.partialorder %v698_v4, %v371_v17  ;;  %431 = vmatpush.msra.mxu1 %v384_v32  ;;  %477 = vmatpush.msra.mxu3 %v384_v32  ;;  %v383_v3 = vld [vmem:[%s948_s4] sm:$0xff]  ;;  %s637_s4 = smov [#allocation5]  }
  0x6b   :  { %v206_v48 = vxor.u32 2147483648, %v201_v36  ;;  %v210_v55 = vsel %vm208_vm13, %v209_v33, %v201_v36  ;;  %v54_v62 = vmul.f32 1.442695, %v51_v56  ;;  %s540_s5 = sshll.u32 %s637_s4, 4  ;;  %s541_s5 = int_to_ptr.vmem [resolvable:$true] %s540_s5 }
  0x6c   :  { %v336_v22 = vsel %vm215_vm10, %v335_v44, %v334_v52  ;;  %432 = vmatpush.msra.mxu1 %v383_v3  ;;  %478 = vmatpush.msra.mxu3 %v383_v3 }
  0x6d   :  { %v339_v47 = vsel %vm873_vm11, %v704_v7, %v336_v22  ;;  %v207_v54 = vsel %vm205_vm12, %v193_v34, %v206_v48  ;;  %587 = vpow2.f32 %v54_v62 }
  0x6e   :  { %v341_v49 = vmul.f32 %v339_v47, %v339_v47  ;;  %v211_v35 = vsel %vm204_vm14, %v207_v54, %v210_v55 }
  0x6f   :  { %v212_v63 = vsel %vm202_vm15, nan, %v211_v35 }
  0x70   :  { %v342_v14 = vmul.f32 -0.001358992, %v341_v49  ;;  %v349_v50 = vmul.f32 -0.00019511016, %v341_v49  ;;  %v367_v10 = vmul.f32 0.5, %v212_v63 }
  0x72   :  { %v343_v29 = vadd.f32 0.041655596, %v342_v14  ;;  %v350_v51 = vadd.f32 0.008332121, %v349_v50  ;;  %v369_v15 = vmul.f32 %v586_v12, %v367_v10 }
  0x73   :  { %v588_v18 = vpop.eup %587 }
  0x74   :  { %v344_v59 = vmul.f32 %v343_v29, %v341_v49  ;;  %v351_v8 = vmul.f32 %v350_v51, %v341_v49  ;;  %v376_v24 = vmul.f32 %v374_v26, %v369_v15 }
  0x76   :  { %v345_v60 = vadd.f32 -0.4999988, %v344_v59  ;;  %v352_v61 = vadd.f32 -0.16666654, %v351_v8  ;;  %v378_v30 = vsel %vm372_vm4, %v376_v24, 0.0 }
  0x78   :  { %v346_v43 = vmul.f32 %v345_v60, %v341_v49  ;;  %v353_v5 = vmul.f32 %v352_v61, %v341_v49 }
  0x7a   :  { %v347_v27 = vadd.f32 1.0, %v346_v43  ;;  %v354_v37 = vadd.f32 1.0, %v353_v5 }
  0x7c   :  { %v355_v20 = vmul.f32 %v354_v37, %v339_v47  ;;  %v363_v46 = vxor.u32 2147483648, %v347_v27 }
  0x7e   :  { %v360_v6 = vxor.u32 2147483648, %v355_v20  ;;  %v364_v13 = vsel %vm362_vm0, %v363_v46, %v355_v20 }
  0x80   :  { %v361_v16 = vsel %vm359_vm1, %v347_v27, %v360_v6 }
  0x81   :  { %v365_v9 = vsel %vm358_vm2, %v361_v16, %v364_v13 }
  0x82   :  { %v366_v21 = vsel %vm356_vm3, nan, %v365_v9 }
  0x83   :  { %v368_v23 = vmul.f32 0.5, %v366_v21 }
  0x85   :  { %v370_v28 = vmul.f32 %v588_v18, %v368_v23 }
  0x87   :  { %v377_v7 = vmul.f32 %v375_v25, %v370_v28 }
  0x89   :  { %v379_v52 = vsel %vm373_vm5, %v377_v7, 0.0 }
  0x8a   :  { %v380_v31 = vpack.c.bf16 %v379_v52, %v378_v30 }
  0x8c   :  { %564 = vmatmul.msk.bf16.vlgmr.msra.gmra.mxu0 %vm389_vm6, %v380_v31 }
 0x109   :  { %v402_v4 = vpop.f32.mrf.mxu0 }
 0x10a   :  { %v403_v34 = vadd.f32 %v402_v4, %v681_v0 }
 0x10c   :  { %565 = vmatmul.msk.f32.vlgmr.msra.gmra.mxu1 %vm410_vm7, %v403_v34 }
 0x111   :  { %v404_v36 = vpop.f32.mrf.mxu0 }
 0x112   :  { %v405_v57 = vadd.f32 %v404_v36, %v686_v1 }
 0x114   :  { %566 = vmatmul.msk.f32.gmra.mxu1 %vm410_vm7, %v405_v57 }
 0x189   :  { %v434_v44 = vpop.f32.mrf.mxu1 }
 0x18a   :  { %v435_v41 = vadd.f32 %v584_v38, %v434_v44 }
 0x18c   :  { %v440_v40 = vmax.f32 %v435_v41, 0.0 }
 0x191   :  { %v437_v22 = vpop.f32.mrf.mxu1 }
 0x192   :  { %v438_v11 = vadd.f32 %v584_v38, %v437_v22 }
 0x194   :  { %v441_v47 = vmax.f32 %v438_v11, 0.0 }
 0x196   :  { %v442_v48 = vpack.c.bf16 %v441_v47, %v440_v40 }
 0x198   :  { %450 = vmatpush.bf16.msra.mxu2 %v442_v48 }
 0x19b   :  { %567 = vmatmul.msk.bf16.vlgmr.msra.gmra.mxu2 %vm389_vm6, %v380_v31 }
 0x19c   :  { %521 = vmatpush.msrb.mxu2 %v883_v42 }
 0x19e   :  { %522 = vmatpush.msrb.mxu2 %v888_v45 }
 0x1a0   :  { %523 = vmatpush.msrb.mxu2 %v384_v32 }
 0x1a2   :  { %524 = vmatpush.msrb.mxu2 %v383_v3 }
 0x21e   :  { %v452_v33 = vpop.f32.mrf.mxu2 }
 0x21f   :  { %v453_v49 = vadd.f32 %v452_v33, %v681_v0 }
 0x221   :  { %568 = vmatmul.msk.f32.vlgmr.msra.gmra.mxu3 %vm410_vm7, %v453_v49 }
 0x226   :  { %v454_v2 = vpop.f32.mrf.mxu2 }
 0x227   :  { %v455_v14 = vadd.f32 %v454_v2, %v686_v1 }
 0x229   :  { %569 = vmatmul.msk.f32.gmra.mxu3 %vm410_vm7, %v455_v14 }
 0x2a4   :  { %v480_v50 = vpop.f32.mrf.mxu3 }
 0x2a5   :  { %v481_v53 = vadd.f32 %v584_v38, %v480_v50 }
 0x2a7   :  { %v486_v54 = vmax.f32 %v481_v53, 0.0 }
 0x2ac   :  { %v483_v39 = vpop.f32.mrf.mxu3 }
 0x2ad   :  { %v484_v42 = vadd.f32 %v584_v38, %v483_v39 }
 0x2af   :  { %v487_v55 = vmax.f32 %v484_v42, 0.0 }
 0x2b1   :  { %v488_v29 = vpack.c.bf16 %v487_v55, %v486_v54 }
 0x2b3   :  { %496 = vmatpush.bf16.msrb.mxu0 %v488_v29 }
 0x2b6   :  { %570 = vmatmul.msk.bf16.vlgmr.msrb.gmra.mxu0 %vm389_vm6, %v380_v31 }
 0x333   :  { %v498_v45 = vpop.f32.mrf.mxu0 }
 0x334   :  { %v499_v51 = vadd.f32 %v498_v45, %v681_v0 }
 0x336   :  { %571 = vmatmul.msk.f32.vlgmr.msrb.gmra.mxu2 %vm410_vm7, %v499_v51 }
 0x33b   :  { %v500_v56 = vpop.f32.mrf.mxu0 }
 0x33c   :  { %v501_v58 = vadd.f32 %v500_v56, %v686_v1 }
 0x33e   :  { %572 = vmatmul.msk.f32.gmra.mxu2 %vm410_vm7, %v501_v58 }
 0x3b9   :  { %v526_v59 = vpop.f32.mrf.mxu2 }
 0x3ba   :  { %v527_v8 = vadd.f32 %v584_v38, %v526_v59 }
 0x3bc   :  { %v532_v35 = vmax.f32 %v527_v8, 0.0 }
 0x3be   :  { %534 = vst.msk [vmem:[#allocation5] sm:$0xff] %vm410_vm7, %v532_v35 }
 0x3c1   :  { %v529_v60 = vpop.f32.mrf.mxu2 }
 0x3c2   :  { %v530_v0 = vadd.f32 %v584_v38, %v529_v60 }
 0x3c4   :  { %v533_v61 = vmax.f32 %v530_v0, 0.0 }
 0x3c6   :  { %535 = vst.msk [vmem:[#allocation5 + $0x8] sm:$0xff] %vm410_vm7, %v533_v61 }
 0x3c7   :  { %548 = dma.vmem_to_hbm [thread:$0]  %s541_s5, 256, %s543_s25, [#allocation3], %s638_s26, %s638_s26, %s639_s27  }
 0x3c8   :  { %627 = dma.done.wait [#allocation3], 256  }
 0x3c9   :  { %628 = vsyncadd [#allocation3], 4294967040 }
 0x3ca   :  { %553 = vsyncpa [#allocation3], 1 }
 0x3cb   :  { %554 = vsyncpa [#allocation4], 1 }

</bundles_post_ra>
